<compile_context>
chip_gen: v6e
topology: v6e:2x2x1
jax: 0.10.0
libtpu: 0.0.40
codegen_flags: <defaults>
</compile_context>

<pallas_src>
import functools

import jax
import jax.numpy as jnp
from jax.experimental import pallas as pl
from jax.experimental.pallas import tpu as pltpu


def _round_up(a, m):
    return (a + m - 1) // m * m


def _meta_head_kernel(x_ref, w_ref, b_ref, o_ref, acc_ref, *, c_total, tc, mask_c):
    # x_ref  : (tb, tc, S)  batch tile (sublanes), channel tile, full spatial (lanes)
    # w_ref  : (tc, Np)     channel-chunk of concatenated head weights (1/S folded in)
    # b_ref  : (1, Np)      concatenated biases (lane-padded), f32
    # o_ref  : (tb, Np)     logits for this batch tile
    # acc_ref: (tb, Np) f32 running partial-matmul accumulator over channel chunks
    ci = pl.program_id(1)

    @pl.when(ci == 0)
    def _():
        acc_ref[...] = jnp.zeros_like(acc_ref)

    # GAP over the full spatial extent of this channel chunk (lane-axis reduce).
    pooled = jnp.sum(x_ref[...].astype(jnp.float32), axis=-1)          # (tb, tc)
    if mask_c:
        # Last channel chunk sticks out past C: zero the out-of-range channels
        # (cheap (1, tc) iota, broadcast in the compare/select).
        col = ci * tc + jax.lax.broadcasted_iota(jnp.int32, (1, tc), 1)
        pooled = jnp.where(col < c_total, pooled, 0.0)

    acc_ref[...] += jnp.dot(pooled, w_ref[...].astype(jnp.float32),
                            preferred_element_type=jnp.float32)         # MXU partial

    @pl.when(ci == pl.num_programs(1) - 1)
    def _():
        o_ref[...] = (acc_ref[...] + b_ref[...]).astype(o_ref.dtype)    # lane-dense vst


def meta_head_forward(x_nchw, w_all, b_all, n_meta, leaf_sizes, *,
                      tb=None, vmem_budget_bytes=32 * 1024 * 1024,
                      stream_dtype=None):
    """Fused MetaHead forward (GAP + every head's Linear in one kernel).

    x_nchw : (B, C, H, W)   (PyTorch NCHW convention)
    w_all  : (C, N) with N = n_meta + sum(leaf_sizes)   [transpose of nn.Linear]
    b_all  : (N,)
    stream_dtype : optional dtype (e.g. jnp.bfloat16) to stream x / weights in.
    returns (meta_output (B, n_meta), [leaf_output_k (B, leaf_sizes[k]) ...])
    """
    B, C, H, W = x_nchw.shape
    S = H * W
    N = w_all.shape[1]
    assert N == n_meta + sum(leaf_sizes), (N, n_meta, leaf_sizes)

    # Fold the GAP 1/S scale into the (tiny) weight on the host side.
    w_s = w_all * (1.0 / S)
    if stream_dtype is not None:
        x_nchw = x_nchw.astype(stream_dtype)
        w_s = w_s.astype(stream_dtype)

    # NCHW -> (B, C, S): free contiguous reshape; spatial is the lane axis.
    x = x_nchw.reshape(B, C, S)

    # Lane-pad the head dimension (cheap one-time pad of the small weight/bias).
    Np = _round_up(N, 128)

    x_itemsize = jnp.dtype(x.dtype).itemsize
    w_itemsize = jnp.dtype(w_s.dtype).itemsize

    # --- Tile selection -----------------------------------------------------
    # Batch tile: >= 8 sublanes; when B > 8 keep >= 2 batch blocks so the
    # "parallel" batch axis can shard across both TensorCores on v7x.
    if tb is None:
        tb = min(128, _round_up(B, 8))
        if B > 8:
            tb = min(tb, _round_up(pl.cdiv(B, 2), 8))
    tb = max(8, _round_up(tb, 8))

    def _block_bytes(tb_, tc_):
        x_b = 2 * tb_ * tc_ * S * x_itemsize      # double-buffered x stream
        w_b = 2 * tc_ * Np * w_itemsize           # double-buffered weight stream
        b_b = 2 * Np * 4                          # bias
        o_b = 2 * tb_ * Np * 4                    # output block
        a_b = tb_ * Np * 4                        # f32 accumulator scratch
        return x_b + w_b + b_b + o_b + a_b

    # Start with the full channel extent; shrink tb first (down to 8), then
    # channel-tile, until the real double-buffered working set fits the budget.
    tc = C
    while _block_bytes(tb, tc) > vmem_budget_bytes and tb > 8:
        tb = max(8, _round_up(tb // 2, 8))
    while _block_bytes(tb, tc) > vmem_budget_bytes and tc > 8:
        tc = max(8, _round_up(tc // 2, 8))

    nb = pl.cdiv(B, tb)
    Bp = nb * tb
    nc = pl.cdiv(C, tc)
    Cp = nc * tc
    mask_c = (C % tc) != 0

    # Pad the small weight/bias (channel rows to Cp with zeros, heads to Np).
    w_p = jnp.pad(w_s, ((0, Cp - C), (0, Np - N)))
    b_p = jnp.pad(b_all, (0, Np - N)).reshape(1, Np).astype(jnp.float32)

    # Scoped VMEM limit derived from the actual footprint (never let the
    # 16/32 MiB scoped default silently cap the x tile); safe on v7x's 64 MiB.
    vmem_limit = int(min(100 * 1024 * 1024,
                         max(32 * 1024 * 1024,
                             _block_bytes(tb, tc) + 4 * 1024 * 1024)))

    kernel = functools.partial(_meta_head_kernel, c_total=C, tc=tc, mask_c=mask_c)

    out = pl.pallas_call(
        kernel,
        out_shape=jax.ShapeDtypeStruct((Bp, Np), jnp.float32),
        grid_spec=pltpu.PrefetchScalarGridSpec(
            num_scalar_prefetch=0,
            grid=(nb, nc),                                            # reduction axis last
            in_specs=[
                pl.BlockSpec((tb, tc, S), lambda bi, ci: (bi, ci, 0)),  # x stream
                pl.BlockSpec((tc, Np), lambda bi, ci: (ci, 0)),         # weight stream
                pl.BlockSpec((1, Np), lambda bi, ci: (0, 0)),           # resident bias
            ],
            out_specs=pl.BlockSpec((tb, Np), lambda bi, ci: (bi, 0)),
            scratch_shapes=[pltpu.VMEM((tb, Np), jnp.float32)],         # logit accumulator
        ),
        compiler_params=pltpu.CompilerParams(
            dimension_semantics=("parallel", "arbitrary"),
            vmem_limit_bytes=vmem_limit),
    )(x, w_p, b_p)

    out = out[:B, :N]
    meta_output = out[:, :n_meta]
    leaf_outputs = []
    off = n_meta
    for sz in leaf_sizes:
        leaf_outputs.append(out[:, off:off + sz])
        off += sz
    return meta_output, leaf_outputs


def init_meta_head_params(key, in_channels, n_meta, leaf_sizes):
    """Deterministic init mimicking nn.Linear default (uniform +-1/sqrt(fan_in)).

    Columns [0:n_meta] -> meta head, then each leaf head, concatenated along
    the output axis of a (in_channels, N) matrix.
    """
    N = n_meta + sum(leaf_sizes)
    kw, kb = jax.random.split(key)
    bound = 1.0 / (in_channels ** 0.5)
    w_all = jax.random.uniform(kw, (in_channels, N), jnp.float32, -bound, bound)
    b_all = jax.random.uniform(kb, (N,), jnp.float32, -bound, bound)
    return w_all, b_all


def _reference(x, w_all, b_all):
    pooled = x.mean(axis=(2, 3))                  # GAP
    return pooled @ w_all + b_all                 # all heads' Linear, concatenated


if __name__ == "__main__":
    key = jax.random.PRNGKey(0)

    # ---- Test 1: small shapes matching the module defaults -----------------
    # meta_classes: 2 meta classes, each covering 2 leaf classes -> classes = 4
    meta_classes = {0: [0, 1], 1: [2, 3]}
    n_meta = len(meta_classes)
    leaf_sizes = [len(meta_classes[k]) for k in meta_classes]

    B, C, H, W = 2, 4, 16, 16
    kx, kp, kx2, kp2 = jax.random.split(key, 4)
    x = jax.random.normal(kx, (B, C, H, W), jnp.float32)
    w_all, b_all = init_meta_head_params(kp, C, n_meta, leaf_sizes)

    meta_out, leaf_outs = meta_head_forward(x, w_all, b_all, n_meta, leaf_sizes)
    meta_out = jax.block_until_ready(meta_out)
    leaf_outs = [jax.block_until_ready(o) for o in leaf_outs]

    ref = _reference(x, w_all, b_all)
    got = jnp.concatenate([meta_out] + leaf_outs, axis=1)
    assert meta_out.shape == (B, n_meta), meta_out.shape
    assert [o.shape for o in leaf_outs] == [(B, s) for s in leaf_sizes]
    assert jnp.allclose(got, ref, atol=1e-5), float(jnp.max(jnp.abs(got - ref)))

    # bf16 streaming path (halves HBM traffic when the backbone is bf16).
    meta_bf, leaf_bf = meta_head_forward(x, w_all, b_all, n_meta, leaf_sizes,
                                         stream_dtype=jnp.bfloat16)
    got_bf = jnp.concatenate([meta_bf] + leaf_bf, axis=1)
    got_bf = jax.block_until_ready(got_bf)
    assert jnp.allclose(got_bf, ref, atol=2e-2, rtol=2e-2), \
        float(jnp.max(jnp.abs(got_bf - ref)))

    # ---- Test 2: exercise channel tiling, channel-edge mask, batch edge ----
    meta_classes2 = {0: [0, 1, 2], 1: [3, 4]}
    n_meta2 = len(meta_classes2)
    leaf_sizes2 = [len(meta_classes2[k]) for k in meta_classes2]
    B2, C2, H2, W2 = 10, 20, 8, 8
    x2 = jax.random.normal(kx2, (B2, C2, H2, W2), jnp.float32)
    w2, b2 = init_meta_head_params(kp2, C2, n_meta2, leaf_sizes2)

    # Tiny budget forces tb=8 (2 batch blocks, batch edge) and tc=8
    # (3 channel blocks, masked channel edge).
    meta2, leaf2 = meta_head_forward(x2, w2, b2, n_meta2, leaf_sizes2,
                                     vmem_budget_bytes=64 * 1024)
    got2 = jnp.concatenate([meta2] + leaf2, axis=1)
    got2 = jax.block_until_ready(got2)
    ref2 = _reference(x2, w2, b2)
    assert jnp.allclose(got2, ref2, atol=1e-5), float(jnp.max(jnp.abs(got2 - ref2)))

    print("KERNEL_OK")
</pallas_src>

<mosaic_0001>
module attributes {stable_mosaic.version = 11 : i64} {
  func.func @_meta_head_kernel(%arg0: i32, %arg1: i32, %arg2: memref<8x4x256xf32, #tpu.memory_space<vmem>>, %arg3: memref<4x128xf32, #tpu.memory_space<vmem>>, %arg4: memref<1x128xf32, #tpu.memory_space<vmem>>, %arg5: memref<8x128xf32, #tpu.memory_space<vmem>>, %arg6: memref<8x128xf32, #tpu.memory_space<vmem>>) attributes {dimension_semantics = [#tpu.dimension_semantics<parallel>, #tpu.dimension_semantics<arbitrary>], iteration_bounds = array<i64: 1, 1>, scalar_prefetch = 0 : i64, scratch_operands = 1 : i64, tpu.core_type = #tpu.core_type<tc>, window_params = [{transform_indices = @transform_0, window_bounds = array<i64: 8, 4, 256>}, {transform_indices = @transform_1, window_bounds = array<i64: 4, 128>}, {pipeline_mode = #tpu.pipeline_mode<synchronous>, transform_indices = @transform_2, window_bounds = array<i64: 1, 128>}, {transform_indices = @transform_3, window_bounds = array<i64: 8, 128>}]} {
    %c0_i32 = arith.constant 0 : i32
    %0 = arith.cmpi eq, %arg1, %c0_i32 : i32
    %1 = arith.extui %0 : i1 to i32
    %c0_i32_0 = arith.constant 0 : i32
    %2 = arith.cmpi ne, %1, %c0_i32_0 : i32
    scf.if %2 {
      %cst_12 = arith.constant 0.000000e+00 : f32
      %13 = vector.broadcast %cst_12 : f32 to vector<8x128xf32>
      %c0_13 = arith.constant 0 : index
      %c0_14 = arith.constant 0 : index
      %14 = vector.load %arg6[%c0_13, %c0_14] : memref<8x128xf32, #tpu.memory_space<vmem>>, vector<8x128xf32>
      tpu.vector_store %arg6[%c0_13, %c0_14], %13 {strides = array<i32>} : memref<8x128xf32, #tpu.memory_space<vmem>>, vector<8x128xf32>,
    } else {
    }
    %c0 = arith.constant 0 : index
    %c0_1 = arith.constant 0 : index
    %c0_2 = arith.constant 0 : index
    %3 = vector.load %arg2[%c0, %c0_1, %c0_2] : memref<8x4x256xf32, #tpu.memory_space<vmem>>, vector<8x4x256xf32>
    %cst = arith.constant dense<0.000000e+00> : vector<8x4xf32>
    %4 = vector.multi_reduction <add>, %3, %cst [2] : vector<8x4x256xf32> to vector<8x4xf32>
    %c0_3 = arith.constant 0 : index
    %c0_4 = arith.constant 0 : index
    %5 = vector.load %arg6[%c0_3, %c0_4] : memref<8x128xf32, #tpu.memory_space<vmem>>, vector<8x128xf32>
    %c0_5 = arith.constant 0 : index
    %c0_6 = arith.constant 0 : index
    %6 = vector.load %arg3[%c0_5, %c0_6] : memref<4x128xf32, #tpu.memory_space<vmem>>, vector<4x128xf32>
    %cst_7 = arith.constant dense<0.000000e+00> : vector<8x128xf32>
    %7 = tpu.matmul %4, %6, %cst_7 {dimension_numbers = #tpu.dot_dimension_numbers<[1], [0], [0], [1], [0, 0, 1, 1], [], []>} : vector<8x4xf32>, vector<4x128xf32>, vector<8x128xf32> -> vector<8x128xf32>
    %8 = arith.addf %5, %7 : vector<8x128xf32>
    %c0_8 = arith.constant 0 : index
    %c0_9 = arith.constant 0 : index
    %9 = vector.load %arg6[%c0_8, %c0_9] : memref<8x128xf32, #tpu.memory_space<vmem>>, vector<8x128xf32>
    tpu.vector_store %arg6[%c0_8, %c0_9], %8 {strides = array<i32>} : memref<8x128xf32, #tpu.memory_space<vmem>>, vector<8x128xf32>,
    %c0_i32_10 = arith.constant 0 : i32
    %10 = arith.cmpi eq, %arg1, %c0_i32_10 : i32
    %11 = arith.extui %10 : i1 to i32
    %c0_i32_11 = arith.constant 0 : i32
    %12 = arith.cmpi ne, %11, %c0_i32_11 : i32
    scf.if %12 {
      %c0_12 = arith.constant 0 : index
      %c0_13 = arith.constant 0 : index
      %13 = vector.load %arg6[%c0_12, %c0_13] : memref<8x128xf32, #tpu.memory_space<vmem>>, vector<8x128xf32>
      %c0_14 = arith.constant 0 : index
      %c0_15 = arith.constant 0 : index
      %14 = vector.load %arg4[%c0_14, %c0_15] : memref<1x128xf32, #tpu.memory_space<vmem>>, vector<1x128xf32>
      %15 = vector.broadcast %14 : vector<1x128xf32> to vector<8x128xf32>
      %16 = arith.addf %13, %15 : vector<8x128xf32>
      %c0_16 = arith.constant 0 : index
      %c0_17 = arith.constant 0 : index
      %17 = vector.load %arg5[%c0_16, %c0_17] : memref<8x128xf32, #tpu.memory_space<vmem>>, vector<8x128xf32>
      tpu.vector_store %arg5[%c0_16, %c0_17], %16 {strides = array<i32>} : memref<8x128xf32, #tpu.memory_space<vmem>>, vector<8x128xf32>,
    } else {
    }
    return
  }
  func.func @transform_0(%arg0: i32, %arg1: i32) -> (i32, i32, i32) {
    %c0_i32 = arith.constant 0 : i32
    %c0_i32_0 = arith.constant 0 : i32
    return %arg0, %arg1, %c0_i32 : i32, i32, i32
  }
  func.func @transform_1(%arg0: i32, %arg1: i32) -> (i32, i32) {
    %c0_i32 = arith.constant 0 : i32
    %c0_i32_0 = arith.constant 0 : i32
    return %arg1, %c0_i32 : i32, i32
  }
  func.func @transform_2(%arg0: i32, %arg1: i32) -> (i32, i32) {
    %c0_i32 = arith.constant 0 : i32
    %c0_i32_0 = arith.constant 0 : i32
    %c0_i32_1 = arith.constant 0 : i32
    return %c0_i32, %c0_i32_0 : i32, i32
  }
  func.func @transform_3(%arg0: i32, %arg1: i32) -> (i32, i32) {
    %c0_i32 = arith.constant 0 : i32
    %c0_i32_0 = arith.constant 0 : i32
    return %arg0, %c0_i32 : i32, i32
  }
}

</mosaic_0001>

<bundles_post_ra>
// kernel: tpu_custom_call.1
= control target key start
LH: loop header
LB: loop body
LE: loop exit
PB: predicated region body
PF: predicated region fallthrough
CT: control target
= control target key end

     0   :  { %8 = vsyncpa [#allocation4], 0  ;;  %s431_s0 = inlined_call_operand.hbm [shape: f32[2,4,256], index: 0, kind: input, shape index: {}]   ;;  %s432_s1 = inlined_call_operand.hbm [shape: f32[4,128], index: 1, kind: input, shape index: {}]   ;;  %s433_s2 = inlined_call_operand.vmem [shape: f32[1,128], index: 2, kind: input, shape index: {}]   ;;  %s434_s3 = inlined_call_operand.hbm [shape: f32[8,128], index: 3, kind: output, shape index: {}]  }
   0x1   :  { %9 = vsyncpa [#allocation7], 0 }
   0x2   :  { %10 = vsyncpa [#allocation5], 0 }
   0x3   :  { %15 = vsyncadd [#allocation4], 768  ;;  %s375_s12 = smov [#allocation3]  }
   0x4   :  { %s16_s13 = sshll.u32 %s375_s12, 4  ;;  %s17_s13 = int_to_ptr.vmem [resolvable:$true] %s16_s13 }
   0x5   :  { %s317_s14 = scalar_lea.vmem %s17_s13, 256  ;;  %s321_s15 = scalar_lea.vmem %s17_s13, 1024 }
   0x6   :  { %p318_p0 = scmp.ne.s32.totalorder %s17_s13, %s317_s14  ;;  %p322_p1 = scmp.lt.s32.totalorder %s17_s13, %s17_s13 }
   0x7   :  { %p323_p2 = scmp.lt.s32.totalorder %s321_s15, %s317_s14 }
   0x9   :  { %p324_p3 = por %p323_p2, %p322_p1 }
   0xb   :  { %p325_p4 = pnand %p324_p3, %p318_p0 }
   0xd   :  { %328 = shalt.err (!%p325_p4)
}
   0xe   :  { %s376_s16 = smov 128   ;;  %s377_s17 = smov 8  }
   0xf   :  { %22 = dma.hbm_to_vmem [thread:$0]  %s431_s0, 256, %s17_s13, [#allocation4], %s376_s16, %s376_s16, %s377_s17  }
  0x10   :  { %s378_s20 = smov [#allocation6]  }
  0x11   :  { %s29_s21 = sshll.u32 %s378_s20, 4  ;;  %s30_s21 = int_to_ptr.vmem [resolvable:$true] %s29_s21 }
  0x12   :  { %s337_s22 = scalar_lea.vmem %s30_s21, 64  ;;  %p342_p6 = scmp.lt.s32.totalorder %s30_s21, %s30_s21 }
  0x13   :  { %p338_p5 = scmp.ne.s32.totalorder %s30_s21, %s337_s22  ;;  %p343_p7 = scmp.lt.s32.totalorder %s337_s22, %s337_s22 }
  0x15   :  { %p344_p8 = por %p343_p7, %p342_p6 }
  0x17   :  { %p345_p9 = pnand %p344_p8, %p338_p5 }
  0x19   :  { %348 = shalt.err (!%p345_p9)
}
  0x1a   :  { %32 = dma.hbm_to_vmem [thread:$0]  %s432_s1, 64, %s30_s21, [#allocation7]  }
  0x1b   :  { %369 = dma.done.wait [#allocation4], 1024  }
  0x1c   :  { %370 = vsyncadd [#allocation4], 4294966272 }
  0x1d   :  { %371 = dma.done.wait [#allocation7], 64  }
  0x1e   :  { %372 = vsyncadd [#allocation7], 4294967232  ;;  %vm78_vm0 = vcmask 1043456   ;;  %v46_v0 = vld [vmem:[#allocation3] sm:$0xff]  ;;  %v48_v1 = vld [vmem:[#allocation3 + $0x10] sm:$0xff]  ;;  %v379_v40 = vmov 0.0   ;;  %v129_v42 = vlaneseq }
  0x1f   :  { %v47_v2 = vld [vmem:[#allocation3 + $0x8] sm:$0xff]  ;;  %v62_v3 = vcombine.high %v46_v0, %v46_v0  ;;  %v79_v4 = vsel %vm78_vm0, %v46_v0, 0.0  ;;  %v64_v5 = vcombine.high %v48_v1, %v48_v1  ;;  %v89_v6 = vsel %vm78_vm0, %v48_v1, 0.0  ;;  %v49_v7 = vld [vmem:[#allocation3 + $0x18] sm:$0xff]  ;;  %v50_v8 = vld [vmem:[#allocation3 + $0x20] sm:$0xff]  ;;  %289 = vmatprep.subr.mxu0 %v379_v40  ;;  %s381_s25 = smov [#allocation8]  }
  0x20   :  { %v63_v9 = vcombine.high %v47_v2, %v47_v2  ;;  %v84_v10 = vsel %vm78_vm0, %v47_v2, 0.0  ;;  %v65_v11 = vcombine.high %v49_v7, %v49_v7  ;;  %v51_v12 = vld [vmem:[#allocation3 + $0x28] sm:$0xff]  ;;  %v94_v15 = vsel %vm78_vm0, %v49_v7, 0.0  ;;  %v52_v21 = vld [vmem:[#allocation3 + $0x30] sm:$0xff]  ;;  %v53_v22 = vld [vmem:[#allocation3 + $0x38] sm:$0xff]  ;;  %s274_s26 = sshll.u32 %s381_s25, 4  ;;  %s275_s26 = int_to_ptr.vmem [resolvable:$true] %s274_s26 }
  0x21   :  { %v80_v13 = vsel %vm78_vm0, %v62_v3, 0.0  ;;  %v90_v14 = vsel %vm78_vm0, %v64_v5, 0.0  ;;  %v66_v16 = vcombine.high %v50_v8, %v50_v8  ;;  %v67_v23 = vcombine.high %v51_v12, %v51_v12  ;;  %v120_v41 = vld [vmem:[#allocation6] sm:$0xf]  ;;  %s349_s27 = scalar_lea.vmem %s275_s26, 128  ;;  %p354_p11 = scmp.lt.s32.totalorder %s275_s26, %s275_s26 }
  0x22   :  { %v81_v17 = vadd.f32 %v80_v13, %v79_v4  ;;  %v91_v18 = vadd.f32 %v90_v14, %v89_v6  ;;  %v85_v19 = vsel %vm78_vm0, %v63_v9, 0.0  ;;  %v95_v20 = vsel %vm78_vm0, %v65_v11, 0.0  ;;  %290 = vmatpush3.msk.msra.mxu0 %vm78_vm0, %v120_v41  ;;  %v286_v5 = vld [vmem:[%s433_s2] ss:$0 sm:$0xff]  ;;  %p350_p10 = scmp.ne.s32.totalorder %s275_s26, %s349_s27  ;;  %p355_p12 = scmp.lt.s32.totalorder %s349_s27, %s349_s27 }
  0x23   :  { %v86_v24 = vadd.f32 %v85_v19, %v84_v10  ;;  %v96_v25 = vadd.f32 %v95_v20, %v94_v15  ;;  %v99_v26 = vsel %vm78_vm0, %v50_v8, 0.0  ;;  %v100_v27 = vsel %vm78_vm0, %v66_v16, 0.0 }
  0x24   :  { %82 = vadd.xlane.f32.xlu0 %v81_v17  ;;  %92 = vadd.xlane.f32.xlu1 %v91_v18  ;;  %v104_v28 = vsel %vm78_vm0, %v51_v12, 0.0  ;;  %v105_v29 = vsel %vm78_vm0, %v67_v23, 0.0  ;;  %v68_v30 = vcombine.high %v52_v21, %v52_v21  ;;  %v69_v31 = vcombine.high %v53_v22, %v53_v22  ;;  %p356_p13 = por %p355_p12, %p354_p11 }
  0x25   :  { %v101_v32 = vadd.f32 %v100_v27, %v99_v26  ;;  %v106_v33 = vadd.f32 %v105_v29, %v104_v28  ;;  %v109_v34 = vsel %vm78_vm0, %v52_v21, 0.0  ;;  %v114_v36 = vsel %vm78_vm0, %v53_v22, 0.0 }
  0x26   :  { %v110_v35 = vsel %vm78_vm0, %v68_v30, 0.0  ;;  %v115_v37 = vsel %vm78_vm0, %v69_v31, 0.0  ;;  %vm380_vm1 = vmmov 0   ;;  %v130_v43 = vand.u32 127, %v129_v42  ;;  %p357_p0 = pnand %p356_p13, %p350_p10 }
  0x27   :  { %v111_v38 = vadd.f32 %v110_v35, %v109_v34  ;;  %v116_v39 = vadd.f32 %v115_v37, %v114_v36  ;;  %291 = vmatprep.mubr.msk.f32.mxu0 %vm380_vm1, %v379_v40  ;;  %v132_v44 = vshrl.u32 %v129_v42, 7  ;;  %vm163_vm2 = vcmask 1041409  }
  0x28   :  { %87 = vadd.xlane.f32.xlu0 %v86_v24  ;;  %97 = vadd.xlane.f32.xlu1 %v96_v25  ;;  %vm165_vm3 = vcmask 1042434   ;;  %vm167_vm4 = vcmask 1043459   ;;  %vm169_vm5 = vcmask 1044484   ;;  %vm171_vm6 = vcmask 1045509  }
  0x29   :  { %v133_v47 = vsub.s32 %v130_v43, %v132_v44  ;;  %vm173_vm7 = vcmask 1046534   ;;  %vm175_vm8 = vcmask 1047559   ;;  %vm177_vm9 = vcmask 31744  }
  0x2c   :  { %102 = vadd.xlane.f32.xlu0 %v101_v32  ;;  %107 = vadd.xlane.f32.xlu1 %v106_v33 }
  0x30   :  { %112 = vadd.xlane.f32.xlu0 %v111_v38  ;;  %117 = vadd.xlane.f32.xlu1 %v116_v39 }
  0xad   :  { %v83_v45 = vpop.xlane.xlu0 %82  ;;  %v93_v46 = vpop.xlane.xlu1 %92 }
  0xae   :  { %v134_v50 = vrot.slane %v83_v45, %v133_v47  ;;  %v142_v53 = vrot.slane %v93_v46, %v133_v47 }
  0xb1   :  { %v88_v48 = vpop.xlane.xlu0 %87  ;;  %v98_v49 = vpop.xlane.xlu1 %97 }
  0xb2   :  { %v138_v51 = vrot.slane %v88_v48, %v133_v47  ;;  %v146_v52 = vrot.slane %v98_v49, %v133_v47 }
  0xb4   :  { %v164_v54 = vsel %vm163_vm2, %v138_v51, %v134_v50 }
  0xb5   :  { %v166_v55 = vsel %vm165_vm3, %v142_v53, %v164_v54  ;;  %v103_v56 = vpop.xlane.xlu0 %102  ;;  %v108_v57 = vpop.xlane.xlu1 %107 }
  0xb6   :  { %v168_v58 = vsel %vm167_vm4, %v146_v52, %v166_v55  ;;  %v150_v59 = vrot.slane %v103_v56, %v133_v47  ;;  %v154_v60 = vrot.slane %v108_v57, %v133_v47 }
  0xb8   :  { %v170_v61 = vsel %vm169_vm5, %v150_v59, %v168_v58 }
  0xb9   :  { %v113_v62 = vpop.xlane.xlu0 %112  ;;  %v118_v63 = vpop.xlane.xlu1 %117  ;;  %v172_v2 = vsel %vm171_vm6, %v154_v60, %v170_v61 }
  0xba   :  { %v158_v0 = vrot.slane %v113_v62, %v133_v47  ;;  %v162_v1 = vrot.slane %v118_v63, %v133_v47 }
  0xbc   :  { %v174_v3 = vsel %vm173_vm7, %v158_v0, %v172_v2 }
  0xbd   :  { %v176_v4 = vsel %vm175_vm8, %v162_v1, %v174_v3 }
  0xbe   :  { %292 = vmatmul.mubr.msk.f32.vlgmr.msra.gmra.mxu0 %vm177_vm9, %v176_v4 }
 0x17e   :  { %v249_v6 = vpop.f32.mrf.mxu0 }
 0x17f   :  { %v266_v7 = vadd.f32 %v286_v5, %v249_v6 }
 0x180   :  { %v293_v8 = vpop.f32.mrf.mxu0 }
 0x181   :  { %267 = vst [vmem:[#allocation8] sm:$0xff] %v266_v7 }
 0x182   :  { %360 = shalt.err (!%p357_p0)
}
 0x183   :  { %277 = dma.vmem_to_hbm [thread:$0]  %s275_s26, 128, %s434_s3, [#allocation5]  }
 0x184   :  { %373 = dma.done.wait [#allocation5], 128  }
 0x185   :  { %374 = vsyncadd [#allocation5], 4294967168 }
 0x186   :  { %281 = vsyncpa [#allocation4], 1 }
 0x187   :  { %282 = vsyncpa [#allocation7], 1 }
 0x188   :  { %283 = vsyncpa [#allocation5], 1 }

</bundles_post_ra>
